<compile_context>
chip_gen: v5e
topology: v5e:2x2
jax: 0.10.0
libtpu: 0.0.40
codegen_flags: <defaults>
</compile_context>

<pallas_src>
import functools

import jax
import jax.numpy as jnp
from jax.experimental import pallas as pl
from jax.experimental.pallas import tpu as pltpu


def _mtl_kernel(x_ref, w_stem_t_ref, w_head_ref, b_head_ref, out_ref, acc_ref,
                *, hw_true, inv_hw, batch_tile):
    # x_ref:        (bt, Cin, hw_tile)  input block (native dtype), HW on lanes
    # w_stem_t_ref: (F, Cin)            bf16 pointwise-conv proxy weight (transposed)
    # w_head_ref:   (F, n_pad)          f32 fused [domain | category | zero-pad] head
    # b_head_ref:   (1, n_pad)          f32 fused bias
    # out_ref:      (bt, n_pad)         f32 fused logits (lane-dense)
    # acc_ref:      (bt, F)             f32 pooled-sum accumulator (resident over s)
    s = pl.program_id(1)

    @pl.when(s == 0)
    def _init():
        acc_ref[...] = jnp.zeros_like(acc_ref)

    _, _, hw_tile = x_ref.shape
    # Mask the ragged spatial tail: the last tile's out-of-range lanes hold
    # stale VMEM, so zero them before the stem (stem has no bias and ReLU(0)=0,
    # so masked columns contribute exactly 0 to the pooled sum).
    lane = jax.lax.broadcasted_iota(jnp.int32, (1, hw_tile), 1)
    valid = (s * hw_tile + lane) < hw_true                  # (1, hw_tile)
    ones_row = jnp.ones((1, hw_tile), jnp.float32)

    w_t = w_stem_t_ref[...]                                 # (F, Cin) bf16, resident
    rows = []
    for b in range(batch_tile):                             # bt is small & static
        xb = jnp.where(valid, x_ref[b], 0.0).astype(w_t.dtype)   # (Cin, hw_tile) bf16
        # Stem on the MXU: (F, Cin) @ (Cin, hw_tile) -> f32 accumulator.
        # K = Cin is tiny (MXU pads K to 128/256); still the fastest unit for it.
        feats = jnp.dot(w_t, xb, preferred_element_type=jnp.float32)
        feats = jnp.maximum(feats, 0.0)                     # ReLU in f32
        # Spatial partial sum on the MXU (trans-B matmul): ones(1,hw) . feats^T
        # -> (1, F).  M=1, K=hw_tile: only a few % extra MXU work, and it keeps
        # the VALU at just the ReLU pass (no sublane/lane reduction trees).
        rows.append(jax.lax.dot_general(
            ones_row, feats,
            dimension_numbers=(((1,), (1,)), ((), ())),
            preferred_element_type=jnp.float32))
    acc_ref[...] += jnp.concatenate(rows, axis=0)           # (bt, F)

    @pl.when(s == pl.num_programs(1) - 1)
    def _finalize():
        pooled = acc_ref[...] * inv_hw                      # (bt, F), kept in f32
        logits = jnp.dot(pooled, w_head_ref[...],
                         preferred_element_type=jnp.float32)  # (bt, n_pad)
        out_ref[...] = logits + b_head_ref[...]


def prepare_params(params, compute_dtype=jnp.bfloat16):
    """One-time host-side prep: transpose+cast stem, fuse heads, pad lanes to 128."""
    w_dom, b_dom = params["w_dom"], params["b_dom"]         # (ND, F), (ND,)
    w_cat, b_cat = params["w_cat"], params["b_cat"]         # (NC, F), (NC,)
    nd, nc = w_dom.shape[0], w_cat.shape[0]
    feat = w_dom.shape[1]
    n_pad = max(128, ((nd + nc + 127) // 128) * 128)

    w_head = jnp.zeros((feat, n_pad), jnp.float32)
    w_head = w_head.at[:, :nd].set(w_dom.T).at[:, nd:nd + nc].set(w_cat.T)
    b_head = jnp.zeros((1, n_pad), jnp.float32)
    b_head = b_head.at[0, :nd].set(b_dom).at[0, nd:nd + nc].set(b_cat)

    return {
        "w_stem_t": params["w_stem"].T.astype(compute_dtype),   # (F, Cin) bf16
        "w_head": w_head,                                        # (F, n_pad) f32 (tiny, resident)
        "b_head": b_head,                                        # (1, n_pad) f32
        "num_domains": nd,
        "num_categories": nc,
        "n_pad": n_pad,
    }


def multi_task_forward(x_nchw, prepared, *, hw_tile=2048, batch_tile=None):
    """x_nchw: (B, Cin, H, W). Returns (domain_preds (B,ND), category_preds (B,NC)).

    VMEM budget note: the f32 feats intermediate is F*hw_tile*4 bytes per batch
    element per step; size hw_tile (and batch_tile) so that plus 2x the x block
    stays within ~48 MiB on v7x (64 MiB physical); v5e/v6e (128 MiB) can go larger.
    """
    B, C, H, W = x_nchw.shape
    HW = H * W
    w_stem_t = prepared["w_stem_t"]                # (F, Cin)
    w_head = prepared["w_head"]                    # (F, n_pad)
    b_head = prepared["b_head"]                    # (1, n_pad)
    feat = w_stem_t.shape[0]
    nd, nc, n_pad = prepared["num_domains"], prepared["num_categories"], prepared["n_pad"]

    # Free reshape only: NCHW -> (B, C, H*W).  No transpose, no pad, no cast in HBM.
    x = x_nchw.reshape(B, C, HW)

    # Spatial (lane-axis) tile: multiple of 128, or the full HW.
    if hw_tile >= HW:
        hw_tile = HW
    else:
        hw_tile = max(128, (hw_tile // 128) * 128)
        if hw_tile >= HW:
            hw_tile = HW
    n_spatial = pl.cdiv(HW, hw_tile)

    # Batch tile: 8-sublane aligned (or the full batch) so the output block is
    # legal; >1 batch tiles let v7x shard the parallel axis across its 2 TCs.
    if batch_tile is None:
        batch_tile = 8 if (B % 8 == 0 and B > 8) else (8 if B == 8 else B)
    bt = batch_tile
    assert B % bt == 0 and (bt % 8 == 0 or bt == B), "batch_tile must divide B and be 8-aligned or full"
    n_btiles = B // bt

    grid = (n_btiles, n_spatial)   # (batch tiles [parallel], spatial reduction [arbitrary])

    kernel = functools.partial(_mtl_kernel, hw_true=HW, inv_hw=1.0 / float(HW),
                               batch_tile=bt)
    cost = pl.CostEstimate(
        flops=2 * B * HW * C * feat + 2 * B * HW * feat + 2 * B * feat * n_pad,
        transcendentals=0,
        bytes_accessed=(x.size * x.dtype.itemsize
                        + w_stem_t.size * w_stem_t.dtype.itemsize
                        + w_head.size * 4 + b_head.size * 4 + B * n_pad * 4),
    )

    fused = pl.pallas_call(
        kernel,
        out_shape=jax.ShapeDtypeStruct((B, n_pad), jnp.float32),
        grid=grid,
        in_specs=[
            pl.BlockSpec((bt, C, hw_tile), lambda b, s: (b, 0, s)),   # stream x, HW on lanes
            pl.BlockSpec((feat, C), lambda b, s: (0, 0)),             # resident weights
            pl.BlockSpec((feat, n_pad), lambda b, s: (0, 0)),
            pl.BlockSpec((1, n_pad), lambda b, s: (0, 0)),
        ],
        out_specs=pl.BlockSpec((bt, n_pad), lambda b, s: (b, 0)),
        scratch_shapes=[pltpu.VMEM((bt, feat), jnp.float32)],
        compiler_params=pltpu.CompilerParams(
            dimension_semantics=("parallel", "arbitrary"),
            # v6e (128 MiB physical) tolerates more; v7x (64 MiB) should keep
            # hw_tile / batch_tile sized so actual usage stays well below this.
            vmem_limit_bytes=64 * 1024 * 1024,
        ),
        cost_estimate=cost,
    )(x, w_stem_t, w_head, b_head)

    return fused[:, :nd], fused[:, nd:nd + nc]


def init_params(key, in_channels, feature_dim, num_domains, num_categories):
    k0, k1, k2, k3, k4 = jax.random.split(key, 5)
    scale_stem = 1.0 / jnp.sqrt(in_channels)
    scale_head = 1.0 / jnp.sqrt(feature_dim)
    return {
        "w_stem": jax.random.normal(k0, (in_channels, feature_dim), jnp.float32) * scale_stem,
        "w_dom": jax.random.normal(k1, (num_domains, feature_dim), jnp.float32) * scale_head,
        "b_dom": jax.random.normal(k2, (num_domains,), jnp.float32) * scale_head,
        "w_cat": jax.random.normal(k3, (num_categories, feature_dim), jnp.float32) * scale_head,
        "b_cat": jax.random.normal(k4, (num_categories,), jnp.float32) * scale_head,
    }


def reference_forward(x_nchw, params, prepared):
    """Pure-JAX reference with the same bf16 stem casts as the kernel."""
    B, C, H, W = x_nchw.shape
    x_flat = x_nchw.reshape(B, C, H * W)
    x_bf = x_flat.astype(jnp.bfloat16).astype(jnp.float32)
    w_bf = params["w_stem"].astype(jnp.bfloat16).astype(jnp.float32)       # (C, F)
    feats = jnp.maximum(jnp.einsum("bcs,cf->bsf", x_bf, w_bf), 0.0)        # (B, HW, F)
    pooled = jnp.mean(feats, axis=1)                                        # (B, F) f32
    fused = pooled @ prepared["w_head"] + prepared["b_head"]                # (B, n_pad)
    nd, nc = prepared["num_domains"], prepared["num_categories"]
    return fused[:, :nd], fused[:, nd:nd + nc]


if __name__ == "__main__":
    # Small shapes consistent with the module's forward:
    #   batch=2, in-channels=4, spatial=16x16
    #   proxy feature_dim=32 (real efficientnet_b1 last-stage channels = 1280)
    #   num_domains=4, num_categories=65 (as in the PyTorch __init__)
    B, CIN, H, W = 2, 4, 16, 16
    FEATURE_DIM, NUM_DOMAINS, NUM_CATEGORIES = 32, 4, 65

    key = jax.random.PRNGKey(0)
    kx, kx2, kp = jax.random.split(key, 3)
    x = jax.random.normal(kx, (B, CIN, H, W), jnp.float32)
    params = init_params(kp, CIN, FEATURE_DIM, NUM_DOMAINS, NUM_CATEGORIES)
    prepared = prepare_params(params)

    # hw_tile=128 so the spatial grid has 2 steps (exercises the accumulator path).
    dom_preds, cat_preds = multi_task_forward(x, prepared, hw_tile=128)
    jax.block_until_ready((dom_preds, cat_preds))

    assert dom_preds.shape == (B, NUM_DOMAINS)
    assert cat_preds.shape == (B, NUM_CATEGORIES)

    dom_ref, cat_ref = reference_forward(x, params, prepared)
    assert jnp.allclose(dom_preds, dom_ref, atol=1e-2, rtol=1e-2)
    assert jnp.allclose(cat_preds, cat_ref, atol=1e-2, rtol=1e-2)

    # Ragged-spatial check (HW=144 is not a multiple of the 128 lane tile):
    # exercises the in-kernel iota mask on the last spatial block.
    x2 = jax.random.normal(kx2, (B, CIN, 12, 12), jnp.float32)
    dom2, cat2 = multi_task_forward(x2, prepared, hw_tile=128)
    jax.block_until_ready((dom2, cat2))
    dom2_ref, cat2_ref = reference_forward(x2, params, prepared)
    assert jnp.allclose(dom2, dom2_ref, atol=1e-2, rtol=1e-2)
    assert jnp.allclose(cat2, cat2_ref, atol=1e-2, rtol=1e-2)

    print("KERNEL_OK")
</pallas_src>

<mosaic_0001>
module attributes {stable_mosaic.version = 11 : i64} {
  func.func @_mtl_kernel(%arg0: i32, %arg1: i32, %arg2: memref<2x4x128xf32, #tpu.memory_space<vmem>>, %arg3: memref<32x4xbf16, #tpu.memory_space<vmem>>, %arg4: memref<32x128xf32, #tpu.memory_space<vmem>>, %arg5: memref<1x128xf32, #tpu.memory_space<vmem>>, %arg6: memref<2x128xf32, #tpu.memory_space<vmem>>, %arg7: memref<2x32xf32, #tpu.memory_space<vmem>>) attributes {dimension_semantics = [#tpu.dimension_semantics<parallel>, #tpu.dimension_semantics<arbitrary>], iteration_bounds = array<i64: 1, 2>, scalar_prefetch = 0 : i64, scratch_operands = 1 : i64, tpu.core_type = #tpu.core_type<tc>, window_params = [{transform_indices = @transform_0, window_bounds = array<i64: 2, 4, 128>}, {pipeline_mode = #tpu.pipeline_mode<synchronous>, transform_indices = @transform_1, window_bounds = array<i64: 32, 4>}, {pipeline_mode = #tpu.pipeline_mode<synchronous>, transform_indices = @transform_2, window_bounds = array<i64: 32, 128>}, {pipeline_mode = #tpu.pipeline_mode<synchronous>, transform_indices = @transform_3, window_bounds = array<i64: 1, 128>}, {transform_indices = @transform_4, window_bounds = array<i64: 2, 128>}]} {
    %c0_i32 = arith.constant 0 : i32
    %0 = arith.cmpi eq, %arg1, %c0_i32 : i32
    %1 = arith.extui %0 : i1 to i32
    %c0_i32_0 = arith.constant 0 : i32
    %2 = arith.cmpi ne, %1, %c0_i32_0 : i32
    scf.if %2 {
      %cst_20 = arith.constant 0.000000e+00 : f32
      %40 = vector.broadcast %cst_20 : f32 to vector<2x32xf32>
      %c0_21 = arith.constant 0 : index
      %c0_22 = arith.constant 0 : index
      %41 = vector.load %arg7[%c0_21, %c0_22] : memref<2x32xf32, #tpu.memory_space<vmem>>, vector<2x32xf32>
      tpu.vector_store %arg7[%c0_21, %c0_22], %40 {strides = array<i32>} : memref<2x32xf32, #tpu.memory_space<vmem>>, vector<2x32xf32>,
    } else {
    }
    %3 = tpu.iota {dimensions = array<i32: 1>} : vector<1x128xi32>
    %c128_i32 = arith.constant 128 : i32
    %4 = arith.muli %arg1, %c128_i32 : i32
    %5 = vector.broadcast %4 : i32 to vector<1x128xi32>
    %6 = arith.addi %5, %3 : vector<1x128xi32>
    %c256_i32 = arith.constant 256 : i32
    %7 = vector.broadcast %c256_i32 : i32 to vector<1x128xi32>
    %8 = arith.cmpi slt, %6, %7 : vector<1x128xi32>
    %cst = arith.constant 1.000000e+00 : f32
    %9 = vector.broadcast %cst : f32 to vector<1x128xf32>
    %c0 = arith.constant 0 : index
    %c0_1 = arith.constant 0 : index
    %10 = vector.load %arg3[%c0, %c0_1] : memref<32x4xbf16, #tpu.memory_space<vmem>>, vector<32x4xbf16>
    %c0_2 = arith.constant 0 : index
    %c0_3 = arith.constant 0 : index
    %c0_4 = arith.constant 0 : index
    %11 = vector.load %arg2[%c0_2, %c0_3, %c0_4] : memref<2x4x128xf32, #tpu.memory_space<vmem>>, vector<1x4x128xf32>
    %12 = vector.shape_cast %11 : vector<1x4x128xf32> to vector<4x128xf32>
    %cst_5 = arith.constant 0.000000e+00 : f32
    %13 = vector.shape_cast %8 : vector<1x128xi1> to vector<1x128xi1>
    %14 = vector.broadcast %13 : vector<1x128xi1> to vector<4x128xi1>
    %15 = vector.broadcast %cst_5 : f32 to vector<4x128xf32>
    %16 = arith.select %14, %12, %15 : vector<4x128xi1>, vector<4x128xf32>
    %17 = arith.truncf %16 : vector<4x128xf32> to vector<4x128xbf16>
    %cst_6 = arith.constant dense<0.000000e+00> : vector<32x128xf32>
    %18 = tpu.matmul %10, %17, %cst_6 {dimension_numbers = #tpu.dot_dimension_numbers<[1], [0], [0], [1], [0, 0, 1, 1], [], []>} : vector<32x4xbf16>, vector<4x128xbf16>, vector<32x128xf32> -> vector<32x128xf32>
    %cst_7 = arith.constant 0.000000e+00 : f32
    %19 = vector.broadcast %cst_7 : f32 to vector<32x128xf32>
    %20 = arith.maximumf %18, %19 : vector<32x128xf32>
    %cst_8 = arith.constant dense<0.000000e+00> : vector<1x32xf32>
    %21 = tpu.matmul %9, %20, %cst_8 {dimension_numbers = #tpu.dot_dimension_numbers<[1], [1], [0], [0], [0, 0, 1, 0], [], []>} : vector<1x128xf32>, vector<32x128xf32>, vector<1x32xf32> -> vector<1x32xf32>
    %c1 = arith.constant 1 : index
    %c0_9 = arith.constant 0 : index
    %c0_10 = arith.constant 0 : index
    %22 = vector.load %arg2[%c1, %c0_9, %c0_10] : memref<2x4x128xf32, #tpu.memory_space<vmem>>, vector<1x4x128xf32>
    %23 = vector.shape_cast %22 : vector<1x4x128xf32> to vector<4x128xf32>
    %cst_11 = arith.constant 0.000000e+00 : f32
    %24 = vector.shape_cast %8 : vector<1x128xi1> to vector<1x128xi1>
    %25 = vector.broadcast %24 : vector<1x128xi1> to vector<4x128xi1>
    %26 = vector.broadcast %cst_11 : f32 to vector<4x128xf32>
    %27 = arith.select %25, %23, %26 : vector<4x128xi1>, vector<4x128xf32>
    %28 = arith.truncf %27 : vector<4x128xf32> to vector<4x128xbf16>
    %cst_12 = arith.constant dense<0.000000e+00> : vector<32x128xf32>
    %29 = tpu.matmul %10, %28, %cst_12 {dimension_numbers = #tpu.dot_dimension_numbers<[1], [0], [0], [1], [0, 0, 1, 1], [], []>} : vector<32x4xbf16>, vector<4x128xbf16>, vector<32x128xf32> -> vector<32x128xf32>
    %cst_13 = arith.constant 0.000000e+00 : f32
    %30 = vector.broadcast %cst_13 : f32 to vector<32x128xf32>
    %31 = arith.maximumf %29, %30 : vector<32x128xf32>
    %cst_14 = arith.constant dense<0.000000e+00> : vector<1x32xf32>
    %32 = tpu.matmul %9, %31, %cst_14 {dimension_numbers = #tpu.dot_dimension_numbers<[1], [1], [0], [0], [0, 0, 1, 0], [], []>} : vector<1x128xf32>, vector<32x128xf32>, vector<1x32xf32> -> vector<1x32xf32>
    %c0_15 = arith.constant 0 : index
    %c0_16 = arith.constant 0 : index
    %33 = vector.load %arg7[%c0_15, %c0_16] : memref<2x32xf32, #tpu.memory_space<vmem>>, vector<2x32xf32>
    %34 = tpu.concatenate %21, %32 in 0 : vector<1x32xf32>, vector<1x32xf32> -> vector<2x32xf32>
    %35 = arith.addf %33, %34 : vector<2x32xf32>
    %c0_17 = arith.constant 0 : index
    %c0_18 = arith.constant 0 : index
    %36 = vector.load %arg7[%c0_17, %c0_18] : memref<2x32xf32, #tpu.memory_space<vmem>>, vector<2x32xf32>
    tpu.vector_store %arg7[%c0_17, %c0_18], %35 {strides = array<i32>} : memref<2x32xf32, #tpu.memory_space<vmem>>, vector<2x32xf32>,
    %c1_i32 = arith.constant 1 : i32
    %37 = arith.cmpi eq, %arg1, %c1_i32 : i32
    %38 = arith.extui %37 : i1 to i32
    %c0_i32_19 = arith.constant 0 : i32
    %39 = arith.cmpi ne, %38, %c0_i32_19 : i32
    scf.if %39 {
      %c0_20 = arith.constant 0 : index
      %c0_21 = arith.constant 0 : index
      %40 = vector.load %arg7[%c0_20, %c0_21] : memref<2x32xf32, #tpu.memory_space<vmem>>, vector<2x32xf32>
      %cst_22 = arith.constant 3.906250e-03 : f32
      %41 = vector.broadcast %cst_22 : f32 to vector<2x32xf32>
      %42 = arith.mulf %40, %41 : vector<2x32xf32>
      %c0_23 = arith.constant 0 : index
      %c0_24 = arith.constant 0 : index
      %43 = vector.load %arg4[%c0_23, %c0_24] : memref<32x128xf32, #tpu.memory_space<vmem>>, vector<32x128xf32>
      %cst_25 = arith.constant dense<0.000000e+00> : vector<2x128xf32>
      %44 = tpu.matmul %42, %43, %cst_25 {dimension_numbers = #tpu.dot_dimension_numbers<[1], [0], [0], [1], [0, 0, 1, 1], [], []>} : vector<2x32xf32>, vector<32x128xf32>, vector<2x128xf32> -> vector<2x128xf32>
      %c0_26 = arith.constant 0 : index
      %c0_27 = arith.constant 0 : index
      %45 = vector.load %arg5[%c0_26, %c0_27] : memref<1x128xf32, #tpu.memory_space<vmem>>, vector<1x128xf32>
      %46 = vector.broadcast %45 : vector<1x128xf32> to vector<2x128xf32>
      %47 = arith.addf %44, %46 : vector<2x128xf32>
      %c0_28 = arith.constant 0 : index
      %c0_29 = arith.constant 0 : index
      %48 = vector.load %arg6[%c0_28, %c0_29] : memref<2x128xf32, #tpu.memory_space<vmem>>, vector<2x128xf32>
      tpu.vector_store %arg6[%c0_28, %c0_29], %47 {strides = array<i32>} : memref<2x128xf32, #tpu.memory_space<vmem>>, vector<2x128xf32>,
    } else {
    }
    return
  }
  func.func @transform_0(%arg0: i32, %arg1: i32) -> (i32, i32, i32) {
    %c0_i32 = arith.constant 0 : i32
    %c0_i32_0 = arith.constant 0 : i32
    return %arg0, %c0_i32, %arg1 : i32, i32, i32
  }
  func.func @transform_1(%arg0: i32, %arg1: i32) -> (i32, i32) {
    %c0_i32 = arith.constant 0 : i32
    %c0_i32_0 = arith.constant 0 : i32
    %c0_i32_1 = arith.constant 0 : i32
    return %c0_i32, %c0_i32_0 : i32, i32
  }
  func.func @transform_2(%arg0: i32, %arg1: i32) -> (i32, i32) {
    %c0_i32 = arith.constant 0 : i32
    %c0_i32_0 = arith.constant 0 : i32
    %c0_i32_1 = arith.constant 0 : i32
    return %c0_i32, %c0_i32_0 : i32, i32
  }
  func.func @transform_3(%arg0: i32, %arg1: i32) -> (i32, i32) {
    %c0_i32 = arith.constant 0 : i32
    %c0_i32_0 = arith.constant 0 : i32
    %c0_i32_1 = arith.constant 0 : i32
    return %c0_i32, %c0_i32_0 : i32, i32
  }
  func.func @transform_4(%arg0: i32, %arg1: i32) -> (i32, i32) {
    %c0_i32 = arith.constant 0 : i32
    %c0_i32_0 = arith.constant 0 : i32
    return %arg0, %c0_i32 : i32, i32
  }
}

</mosaic_0001>

<bundles_post_ra>
// kernel: tpu_custom_call.1
= control target key start
LH: loop header
LB: loop body
LE: loop exit
PB: predicated region body
PF: predicated region fallthrough
CT: control target
= control target key end

     0   :  { %9 = vsyncpa [#allocation5], 0  ;;  %s877_s0 = inlined_call_operand.vmem [shape: f32[2,4,256], index: 0, kind: input, shape index: {}]   ;;  %s878_s1 = inlined_call_operand.vmem [shape: bf16[32,4], index: 1, kind: input, shape index: {}]   ;;  %s879_s2 = inlined_call_operand.hbm [shape: f32[32,128], index: 2, kind: input, shape index: {}]   ;;  %s880_s3 = inlined_call_operand.vmem [shape: f32[1,128], index: 3, kind: input, shape index: {}]   ;;  %s881_s4 = inlined_call_operand.hbm [shape: f32[2,128], index: 4, kind: output, shape index: {}]  }
   0x1   :  { %10 = vsyncpa [#allocation6], 0  ;;  %s769_s15 = smov 0   ;;  %s771_s16 = smov 0  }
   0x2   :  { %s773_s17 = smov 0   ;;  %s775_s18 = smov 0  }
   0x3   :  { %s777_s19 = smov 0  }
   0x4 LB: > { %s536_s20 = sadd.s32 4294967295, %s736_s19   ;;  %s25_s21 = sadd.s32 1, %s732_s18  ;;  %s736_s19 = sphi %s777_s19, %s16_s19   ;;  %s732_s18 = sphi %s775_s18, %s888_s18   ;;  %s728_s17 = sphi %s773_s17, %s887_s17   ;;  %s724_s16 = sphi %s771_s16, %s886_s16   ;;  %s720_s15 = sphi %s769_s15, %s885_s15  }
   0x5   : > { %p26_p0 = scmp.ge.s32.totalorder %s25_s21, 2  ;;  %s37_s22 = sadd.s32 1, %s724_s16 }
   0x6   : > { %p44_p1 = scmp.ne.s32.totalorder %s724_s16, %s720_s15  ;;  %p45_p2 = scmp.eq.s32.totalorder %s736_s19, 0 }
   0x7   : > { %s890_s21 = smov (%p26_p0, %s25_s21), 0  ;;  %p537_p4 = scmp.ge.s32.totalorder %s736_s19, 1 }
   0x8   : > { %p802_p3 = por %p45_p2, %p44_p1  ;;  %s33_s24 = ssub.s32 %s732_s18, %s890_s21 }
   0x9   : > { %p150_p5 = scmp.lt.s32.totalorder %s736_s19, 3  ;;  %p35_p6 = scmp.eq.s32.totalorder %s33_s24, 0 }
   0xa   : > { %p816_p8 = scmp.eq.s32.totalorder %s536_s20, 0  ;;  %s164_s30 = sshll.u32 %s879_s2, 4  ;;  %s165_s30 = int_to_ptr.hbm [resolvable:$true] %s164_s30 }
   0xb   : > { %p810_p7 = pnand %p537_p4, %p150_p5  ;;  %s738_s5 = smov [#allocation4]  }
   0xc   : > { %s821_s27 = scalar_select %p35_p6, %s724_s16, %s37_s22  }
   0xd   : > { %p577_p9 = pneg %p810_p7  ;;  %s166_s6 = sshll.u32 %s738_s5, 4  ;;  %s167_s6 = int_to_ptr.vmem [resolvable:$true] %s166_s6 }
   0xe   : > { %s739_s7 = smov 128   ;;  %s740_s8 = smov 8  }
   0xf   : > { %p578_p10 = pnand %p816_p8, %p577_p9  ;;  %p539_p11 = scmp.ge.s32.totalorder %s736_s19, 2 }
  0x11   : > { %580 = dma.hbm_to_vmem [thread:$0]  (!%p578_p10), %s165_s30, 512, %s167_s6, [#allocation5], %s739_s7, %s739_s7, %s740_s8  }
  0x12   : > { %179 = sbr.rel (%p539_p11) target bundleno = 29 (0x1d), region = 28 }
  0x17   : > { %182 = sbr.rel (!%p802_p3) target bundleno = 29 (0x1d), region = 32  ;;  %s184_s9 = sand.u32 (%p802_p3), 1, %s724_s16  }
  0x18   : > { %s541_s10 = sshll.u32 (%p802_p3), %s732_s18, 2  ;;  %s540_s11 = sshll.u32 (%p802_p3), %s184_s9, 3 }
  0x19   : > { %s191_s14 = scalar_lea.vmem (%p802_p3), %s877_s0, %s541_s10  ;;  %s186_s22 = scalar_lea.vmem (%p802_p3), [#allocation3], %s540_s11 }
  0x1a   : > { %v208_v0 = vld [vmem:[%s191_s14] sm:$0xf] (%p802_p3)  ;;  %v210_v1 = vld [vmem:[%s191_s14 + $0x8] sm:$0xf] (%p802_p3) }
  0x1b   : > { %209 = vst [vmem:[%s186_s22] sm:$0xf] (%p802_p3), %v208_v0 }
  0x1c   : > { %211 = vst [vmem:[%s186_s22 + $0x4] sm:$0xf] %v210_v1 }
  0x1d PF: > { %242 = sbr.rel (%p810_p7) target bundleno = 513 (0x201), region = 73  ;;  %s245_s23 = sand.u32 (!%p810_p7), 1, %s720_s15  }
  0x1e   : > { %s543_s24 = sshll.u32 (!%p810_p7), %s245_s23, 3 }
  0x1f   : > { %s247_s28 = scalar_lea.vmem (!%p810_p7), [#allocation3], %s543_s24 }
  0x22   : > { %711 = dma.done.wait (%p816_p8), [#allocation5], 512  }
  0x23   : > { %713 = vsyncadd (%p816_p8), [#allocation5], 4294966784  ;;  %p545_p12 = scmp.ne.s32.totalorder %s728_s17, 0 }
  0x25   : > { %275 = sbr.rel (%p545_p12) target bundleno = 44 (0x2c), region = 85 }
  0x2a   : > { %vm276_vm0 = vcmask 254976   ;;  %v741_v2 = vmov 0.0  }
  0x2b   : > { %277 = vst.msk [vmem:[#allocation2] sm:$0x3] %vm276_vm0, %v741_v2 }
  0x2c PF: > { %v278_v3 = vlaneseq  ;;  %s546_s25 = sshll.u32 %s728_s17, 7  ;;  %v557_v7 = vld [vmem:[%s247_s28 + $0x4] sm:$0xf]  ;;  %v288_v8 = vld [vmem:[%s247_s28] sm:$0xf]  ;;  %vm310_vm2 = vcmask 1041408  }
  0x2d   : > { %v281_v4 = vstv %s546_s25  ;;  %v566_v14 = vld [vmem:[%s878_s1] sm:$0xff]  ;;  %vm303_vm3 = vcmask 31744   ;;  %v567_v16 = vld [vmem:[%s878_s1 + $0x8] sm:$0xff]  ;;  %v742_v28 = vmov 1.0   ;;  %vm411_vm4 = vcmask 1040384   ;;  %p560_p13 = scmp.ne.s32.totalorder %s728_s17, 1 }
  0x2e   : > { %v279_v5 = vand.u32 127, %v278_v3  ;;  %vm414_vm5 = vcmask 254976  }
  0x30   : > { %v282_v6 = vadd.s32 %v281_v4, %v279_v5 }
  0x32   : > { %vm283_vm1 = vcmp.lt.s32.totalorder %v282_v6, 256  ;;  %v407_v37 = vld [vmem:[#allocation2] sm:$0x3] }
  0x33   : > { %v359_v9 = vsel %vm283_vm1, %v557_v7, 0.0  ;;  %v291_v10 = vsel %vm283_vm1, %v288_v8, 0.0 }
  0x34   : > { %v360_v11 = vpack.c.bf16 %v359_v9, %v359_v9  ;;  %v292_v12 = vpack.c.bf16 %v291_v10, %v291_v10 }
  0x36   : > { %v362_v13 = vsel %vm310_vm2, %v360_v11, 0  ;;  %v312_v15 = vsel %vm310_vm2, %v292_v12, 0 }
  0x37   : > { %371 = vmatpush.bf16.msra.mxu2 %v362_v13  ;;  %568 = vmatpush.bf16.msra.mxu1 %v312_v15 }
  0x38   : > { %321 = vmatpush.bf16.msra.mxu0 %v312_v15 }
  0x3a   : > { %558 = vmatmul.msk.bf16.vlgmr.msra.gmra.mxu2 %vm303_vm3, %v566_v14  ;;  %556 = vmatmul.msk.bf16.vlgmr.msra.gmra.mxu1 %vm303_vm3, %v567_v16 }
  0x3b   : > { %555 = vmatmul.msk.bf16.vlgmr.msra.gmra.mxu0 %vm303_vm3, %v566_v14 }
  0x4a   : > { %559 = vmatmul.msk.bf16.gmra.mxu2 %vm303_vm3, %v567_v16 }
  0xb7   : > { %v328_v17 = vpop.f32.mrf.mxu1 }
  0xb8   : > { %v323_v18 = vpop.f32.mrf.mxu0  ;;  %v335_v22 = vmax.f32 %v328_v17, 0.0 }
  0xb9   : > { %v333_v26 = vmax.f32 %v323_v18, 0.0 }
  0xbd   : > { %v373_v19 = vpop.f32.mrf.mxu2 }
  0xbe   : > { %v383_v33 = vmax.f32 %v373_v19, 0.0 }
  0xbf   : > { %v330_v20 = vpop.f32.mrf.mxu1 }
  0xc0   : > { %v336_v21 = vmax.f32 %v330_v20, 0.0  ;;  %v325_v23 = vpop.f32.mrf.mxu0 }
  0xc1   : > { %v334_v25 = vmax.f32 %v325_v23, 0.0 }
  0xc2   : > { %349 = vmatpush.xpose.msrb.mxu1 %v336_v21 }
  0xc5   : > { %v375_v24 = vpop.f32.mrf.mxu2 }
  0xc6   : > { %350 = vmatpush.xpose.msrb.mxu1 %v335_v22  ;;  %v384_v32 = vmax.f32 %v375_v24, 0.0 }
  0xca   : > { %351 = vmatpush.xpose.msrb.mxu1 %v334_v25 }
  0xcd   : > { %v378_v27 = vpop.f32.mrf.mxu2 }
  0xce   : > { %352 = vmatpush.xpose.msrb.mxu1 %v333_v26  ;;  %v385_v31 = vmax.f32 %v378_v27, 0.0 }
  0xd1   : > { %353 = vmatmul.f32.vlgmr.msrb.gmra.mxu1 %v742_v28 }
  0xd5   : > { %v380_v29 = vpop.f32.mrf.mxu2 }
  0xd6   : > { %v386_v30 = vmax.f32 %v380_v29, 0.0 }
  0xd8   : > { %399 = vmatpush.xpose.msra.mxu3 %v386_v30 }
  0xdc   : > { %400 = vmatpush.xpose.msra.mxu3 %v385_v31 }
  0xe0   : > { %401 = vmatpush.xpose.msra.mxu3 %v384_v32 }
  0xe4   : > { %402 = vmatpush.xpose.msra.mxu3 %v383_v33 }
  0xe7   : > { %403 = vmatmul.f32.vlgmr.msra.gmra.mxu3 %v742_v28 }
 0x14e   : > { %v354_v35 = vpop.f32.mrf.mxu1 }
 0x16a   : > { %v404_v34 = vpop.f32.mrf.mxu3 }
 0x16b   : > { %v409_v36 = vrot.slane %v404_v34, 7 }
 0x16c   : > { %419 = sbr.rel (%p560_p13) target bundleno = 507 (0x1fb), region = 89 }
 0x16d   : > { %v412_v38 = vsel %vm411_vm4, %v354_v35, %v409_v36 }
 0x16e   : > { %v413_v39 = vadd.f32 %v412_v38, %v407_v37 }
 0x170   : > { %415 = vst.msk [vmem:[#allocation2] sm:$0x3] %vm414_vm5, %v413_v39 }
 0x171   : > { %v425_v40 = vld [vmem:[#allocation4 + $0x18] sm:$0xff]  ;;  %v424_v41 = vld [vmem:[#allocation4 + $0x10] sm:$0xff]  ;;  %v423_v43 = vld [vmem:[#allocation4 + $0x8] sm:$0xff]  ;;  %vm430_vm6 = vcmask 261120  }
 0x172   : > { %446 = vmatpush.msra.mxu0 %v425_v40  ;;  %v422_v44 = vld [vmem:[#allocation4] sm:$0xff]  ;;  %v631_v46 = vld [vmem:[%s880_s3] ss:$0 sm:$0xff] }
 0x174   : > { %447 = vmatpush.msra.mxu0 %v424_v41 }
 0x176   : > { %448 = vmatpush.msra.mxu0 %v423_v43 }
 0x177   : > { %v420_v42 = vld [vmem:[#allocation2] sm:$0x3] }
 0x178   : > { %v421_v45 = vmul.f32 0.00390625, %v420_v42  ;;  %449 = vmatpush.msra.mxu0 %v422_v44 }
 0x17a   : > { %561 = vmatmul.msk.f32.vlgmr.msra.gmra.mxu0 %vm430_vm6, %v421_v45 }
 0x1f7   : > { %v451_v47 = vpop.f32.mrf.mxu0 }
 0x1f8   : > { %v452_v48 = vadd.f32 %v631_v46, %v451_v47 }
 0x1fa   : > { %454 = vst [vmem:[#allocation7] sm:$0x3] %v452_v48 }
 0x1fb PF: > { %p583_p0 = scmp.eq.s32.totalorder %s536_s20, 1  ;;  %s465_s8 = sshll.u32 %s881_s4, 4  ;;  %s466_s8 = int_to_ptr.hbm [resolvable:$true] %s465_s8 }
 0x1fc   : > { %s743_s9 = smov [#allocation7]  }
 0x1fd   : > { %s463_s10 = sshll.u32 %s743_s9, 4  ;;  %s464_s10 = int_to_ptr.vmem [resolvable:$true] %s463_s10 }
 0x1fe   : > { %574 = dma.vmem_to_hbm [thread:$0]  (%p583_p0), %s464_s10, 32, %s466_s8, [#allocation6]  }
 0x1ff   : > { %715 = dma.done.wait (%p583_p0), [#allocation6], 32  }
 0x200   : > { %717 = vsyncadd (%p583_p0), [#allocation6], 4294967264 }
 0x201 PF: > { %s16_s19 = sadd.s32 1, %s736_s19   ;;  %s885_s15 = smov %s724_s16 }
 0x202   : > { %p13_p1 = scmp.ge.s32.totalorder %s16_s19, 4   ;;  %s886_s16 = smov %s821_s27 }
 0x203   : > { %s887_s17 = smov %s732_s18  ;;  %s888_s18 = smov %s890_s21 }
 0x204   :  { %15 = sbr.rel (!%p13_p1) target bundleno = 4 (0x4), region = 124 }
 0x209   :  { %479 = vsyncpa [#allocation5], 1 }
 0x20a   :  { %481 = vsyncpa [#allocation5 + $0x1], 1 }
 0x20b   :  { %482 = vsyncpa [#allocation6], 1 }
 0x20c   :  { %484 = vsyncpa [#allocation6 + $0x1], 1 }

</bundles_post_ra>
